<compile_context>
chip_gen: v5e
topology: v5e:2x2
jax: 0.10.0
libtpu: 0.0.40
codegen_flags: <defaults>
</compile_context>

<pallas_src>
import math
import jax
import jax.numpy as jnp
from jax.experimental import pallas as pl
from jax.experimental.pallas import tpu as pltpu


def _mlp_kernel(x_ref,
                w1_ref, b1_ref,
                w2_ref, b2_ref,
                w3_ref, b3_ref,
                wh_ref, bh_ref,
                out_ref):
    # One batch tile per grid step; all weights resident in VMEM.
    x = x_ref[...]

    h = jnp.dot(x, w1_ref[...], preferred_element_type=jnp.float32) + b1_ref[...]
    h = jnp.maximum(h, 0.0)                                   # ReLU

    h = jnp.dot(h, w2_ref[...], preferred_element_type=jnp.float32) + b2_ref[...]
    h = jnp.maximum(h, 0.0)                                   # ReLU

    h = jnp.dot(h, w3_ref[...], preferred_element_type=jnp.float32) + b3_ref[...]
    h = jnp.maximum(h, 0.0)                                   # ReLU

    # Fused, zero-padded head: one lane-dense (TM, 128) store for [y | rho | 0-pad].
    out_ref[...] = (jnp.dot(h, wh_ref[...], preferred_element_type=jnp.float32)
                    + bh_ref[...]).astype(out_ref.dtype)


def _round_up(v, m):
    return -(-v // m) * m


def standard_net_forward(x, params, *, tm=None):
    """Fused forward pass. x: (B, input_size) float32. Returns (y_avg, rho)."""
    B, in_size = x.shape
    out_size = params["b4"].shape[1]

    # --- Fuse the two heads and pad to a lane-dense width (multiple of 128). ---
    n_head = 2 * out_size
    n_pad = max(128, _round_up(n_head, 128))
    head_w = jnp.pad(jnp.concatenate([params["w4"], params["w4_2"]], axis=1),
                     ((0, 0), (0, n_pad - n_head)))           # (64, n_pad)
    head_b = jnp.pad(jnp.concatenate([params["b4"], params["b4_2"]], axis=1),
                     ((0, 0), (0, n_pad - n_head)))           # (1, n_pad)

    # --- Batch tile size (multiple of 8 sublanes). Tiny batches -> single step. ---
    if tm is None:
        tm = _round_up(B, 8) if B <= 512 else 512
    tm = max(8, _round_up(tm, 8))

    # Pad batch so the grid divides evenly; padded rows are sliced off afterwards.
    Bp = _round_up(B, tm)
    x_in = jnp.pad(x, ((0, Bp - B), (0, 0))) if Bp != B else x
    grid = (Bp // tm,)

    def resident(shape):
        # Weights / biases: full-array block, same block every grid step
        # -> DMA'd once, stays in VMEM.
        return pl.BlockSpec(shape, lambda i: (0, 0))

    out = pl.pallas_call(
        _mlp_kernel,
        out_shape=jax.ShapeDtypeStruct((Bp, n_pad), jnp.float32),
        grid=grid,
        in_specs=[
            pl.BlockSpec((tm, in_size), lambda i: (i, 0)),    # x: tiled over batch
            resident(params["w1"].shape), resident(params["b1"].shape),
            resident(params["w2"].shape), resident(params["b2"].shape),
            resident(params["w3"].shape), resident(params["b3"].shape),
            resident(head_w.shape), resident(head_b.shape),
        ],
        out_specs=pl.BlockSpec((tm, n_pad), lambda i: (i, 0)),
        compiler_params=pltpu.CompilerParams(
            dimension_semantics=("parallel",)),               # megacore on v7x
    )(x_in,
      params["w1"], params["b1"],
      params["w2"], params["b2"],
      params["w3"], params["b3"],
      head_w, head_b)

    y_avg = out[:B, :out_size]
    rho = out[:B, out_size:n_head]
    return y_avg, rho


def init_standard_net_params(key, input_size, output_size):
    """Deterministic init mimicking PyTorch nn.Linear (uniform(-1/sqrt(fan_in), +))."""
    hl = [128, 64]
    dims = [(input_size, hl[0]),   # linear1
            (hl[0], hl[1]),        # linear2
            (hl[1], hl[1]),        # linear3
            (hl[1], output_size),  # linear4
            (hl[1], output_size)]  # linear4_2
    names = ["1", "2", "3", "4", "4_2"]
    params = {}
    for (fan_in, fan_out), name in zip(dims, names):
        key, kw, kb = jax.random.split(key, 3)
        bound = 1.0 / math.sqrt(fan_in)
        # stored as (in, out) so the kernel does x @ W
        params[f"w{name}"] = jax.random.uniform(
            kw, (fan_in, fan_out), jnp.float32, -bound, bound)
        # bias kept 2D (1, out) for clean VMEM broadcast
        params[f"b{name}"] = jax.random.uniform(
            kb, (1, fan_out), jnp.float32, -bound, bound)
    return params


def reference_forward(x, params):
    h = jnp.maximum(x @ params["w1"] + params["b1"], 0.0)
    h = jnp.maximum(h @ params["w2"] + params["b2"], 0.0)
    h = jnp.maximum(h @ params["w3"] + params["b3"], 0.0)
    return h @ params["w4"] + params["b4"], h @ params["w4_2"] + params["b4_2"]


# TODO(synk): forward_dist's torch.normal sampling is host-side glue, not part of the
# hot path; it can be reproduced with jax.random.normal outside the kernel if needed.

if __name__ == "__main__":
    key = jax.random.PRNGKey(0)
    kp, kx, kx2 = jax.random.split(key, 3)

    batch = 8
    input_size = 32
    output_size = 8

    params = init_standard_net_params(kp, input_size, output_size)
    x = jax.random.normal(kx, (batch, input_size), jnp.float32)

    # Small-batch path (single grid step).
    y_avg, rho = standard_net_forward(x, params)
    jax.block_until_ready((y_avg, rho))
    y_ref, rho_ref = reference_forward(x, params)
    assert jnp.allclose(y_avg, y_ref, atol=1e-4, rtol=1e-4)
    assert jnp.allclose(rho, rho_ref, atol=1e-4, rtol=1e-4)

    # Multi-tile path (exercises the grid + ragged-batch padding).
    big_b = 600                                  # not a multiple of the 512 tile
    x_big = jax.random.normal(kx2, (big_b, input_size), jnp.float32)
    y_big, rho_big = standard_net_forward(x_big, params)
    jax.block_until_ready((y_big, rho_big))
    y_big_ref, rho_big_ref = reference_forward(x_big, params)
    assert jnp.allclose(y_big, y_big_ref, atol=1e-4, rtol=1e-4)
    assert jnp.allclose(rho_big, rho_big_ref, atol=1e-4, rtol=1e-4)

    print("KERNEL_OK")
</pallas_src>

<mosaic_0001>
module attributes {stable_mosaic.version = 11 : i64} {
  func.func @_mlp_kernel(%arg0: i32, %arg1: memref<8x32xf32, #tpu.memory_space<vmem>>, %arg2: memref<32x128xf32, #tpu.memory_space<vmem>>, %arg3: memref<1x128xf32, #tpu.memory_space<vmem>>, %arg4: memref<128x64xf32, #tpu.memory_space<vmem>>, %arg5: memref<1x64xf32, #tpu.memory_space<vmem>>, %arg6: memref<64x64xf32, #tpu.memory_space<vmem>>, %arg7: memref<1x64xf32, #tpu.memory_space<vmem>>, %arg8: memref<64x128xf32, #tpu.memory_space<vmem>>, %arg9: memref<1x128xf32, #tpu.memory_space<vmem>>, %arg10: memref<8x128xf32, #tpu.memory_space<vmem>>) attributes {dimension_semantics = [#tpu.dimension_semantics<parallel>], iteration_bounds = array<i64: 1>, scalar_prefetch = 0 : i64, scratch_operands = 0 : i64, tpu.core_type = #tpu.core_type<tc>, window_params = [{transform_indices = @transform_0, window_bounds = array<i64: 8, 32>}, {pipeline_mode = #tpu.pipeline_mode<synchronous>, transform_indices = @transform_1, window_bounds = array<i64: 32, 128>}, {pipeline_mode = #tpu.pipeline_mode<synchronous>, transform_indices = @transform_2, window_bounds = array<i64: 1, 128>}, {pipeline_mode = #tpu.pipeline_mode<synchronous>, transform_indices = @transform_3, window_bounds = array<i64: 128, 64>}, {pipeline_mode = #tpu.pipeline_mode<synchronous>, transform_indices = @transform_4, window_bounds = array<i64: 1, 64>}, {pipeline_mode = #tpu.pipeline_mode<synchronous>, transform_indices = @transform_5, window_bounds = array<i64: 64, 64>}, {pipeline_mode = #tpu.pipeline_mode<synchronous>, transform_indices = @transform_6, window_bounds = array<i64: 1, 64>}, {pipeline_mode = #tpu.pipeline_mode<synchronous>, transform_indices = @transform_7, window_bounds = array<i64: 64, 128>}, {pipeline_mode = #tpu.pipeline_mode<synchronous>, transform_indices = @transform_8, window_bounds = array<i64: 1, 128>}, {transform_indices = @transform_9, window_bounds = array<i64: 8, 128>}]} {
    %c0 = arith.constant 0 : index
    %c0_0 = arith.constant 0 : index
    %0 = vector.load %arg1[%c0, %c0_0] : memref<8x32xf32, #tpu.memory_space<vmem>>, vector<8x32xf32>
    %c0_1 = arith.constant 0 : index
    %c0_2 = arith.constant 0 : index
    %1 = vector.load %arg2[%c0_1, %c0_2] : memref<32x128xf32, #tpu.memory_space<vmem>>, vector<32x128xf32>
    %cst = arith.constant dense<0.000000e+00> : vector<8x128xf32>
    %2 = tpu.matmul %0, %1, %cst {dimension_numbers = #tpu.dot_dimension_numbers<[1], [0], [0], [1], [0, 0, 1, 1], [], []>} : vector<8x32xf32>, vector<32x128xf32>, vector<8x128xf32> -> vector<8x128xf32>
    %c0_3 = arith.constant 0 : index
    %c0_4 = arith.constant 0 : index
    %3 = vector.load %arg3[%c0_3, %c0_4] : memref<1x128xf32, #tpu.memory_space<vmem>>, vector<1x128xf32>
    %4 = vector.broadcast %3 : vector<1x128xf32> to vector<8x128xf32>
    %5 = arith.addf %2, %4 : vector<8x128xf32>
    %cst_5 = arith.constant 0.000000e+00 : f32
    %6 = vector.broadcast %cst_5 : f32 to vector<8x128xf32>
    %7 = arith.maximumf %5, %6 : vector<8x128xf32>
    %c0_6 = arith.constant 0 : index
    %c0_7 = arith.constant 0 : index
    %8 = vector.load %arg4[%c0_6, %c0_7] : memref<128x64xf32, #tpu.memory_space<vmem>>, vector<128x64xf32>
    %cst_8 = arith.constant dense<0.000000e+00> : vector<8x64xf32>
    %9 = tpu.matmul %7, %8, %cst_8 {dimension_numbers = #tpu.dot_dimension_numbers<[1], [0], [0], [1], [0, 0, 1, 1], [], []>} : vector<8x128xf32>, vector<128x64xf32>, vector<8x64xf32> -> vector<8x64xf32>
    %c0_9 = arith.constant 0 : index
    %c0_10 = arith.constant 0 : index
    %10 = vector.load %arg5[%c0_9, %c0_10] : memref<1x64xf32, #tpu.memory_space<vmem>>, vector<1x64xf32>
    %11 = vector.broadcast %10 : vector<1x64xf32> to vector<8x64xf32>
    %12 = arith.addf %9, %11 : vector<8x64xf32>
    %cst_11 = arith.constant 0.000000e+00 : f32
    %13 = vector.broadcast %cst_11 : f32 to vector<8x64xf32>
    %14 = arith.maximumf %12, %13 : vector<8x64xf32>
    %c0_12 = arith.constant 0 : index
    %c0_13 = arith.constant 0 : index
    %15 = vector.load %arg6[%c0_12, %c0_13] : memref<64x64xf32, #tpu.memory_space<vmem>>, vector<64x64xf32>
    %cst_14 = arith.constant dense<0.000000e+00> : vector<8x64xf32>
    %16 = tpu.matmul %14, %15, %cst_14 {dimension_numbers = #tpu.dot_dimension_numbers<[1], [0], [0], [1], [0, 0, 1, 1], [], []>} : vector<8x64xf32>, vector<64x64xf32>, vector<8x64xf32> -> vector<8x64xf32>
    %c0_15 = arith.constant 0 : index
    %c0_16 = arith.constant 0 : index
    %17 = vector.load %arg7[%c0_15, %c0_16] : memref<1x64xf32, #tpu.memory_space<vmem>>, vector<1x64xf32>
    %18 = vector.broadcast %17 : vector<1x64xf32> to vector<8x64xf32>
    %19 = arith.addf %16, %18 : vector<8x64xf32>
    %cst_17 = arith.constant 0.000000e+00 : f32
    %20 = vector.broadcast %cst_17 : f32 to vector<8x64xf32>
    %21 = arith.maximumf %19, %20 : vector<8x64xf32>
    %c0_18 = arith.constant 0 : index
    %c0_19 = arith.constant 0 : index
    %22 = vector.load %arg8[%c0_18, %c0_19] : memref<64x128xf32, #tpu.memory_space<vmem>>, vector<64x128xf32>
    %cst_20 = arith.constant dense<0.000000e+00> : vector<8x128xf32>
    %23 = tpu.matmul %21, %22, %cst_20 {dimension_numbers = #tpu.dot_dimension_numbers<[1], [0], [0], [1], [0, 0, 1, 1], [], []>} : vector<8x64xf32>, vector<64x128xf32>, vector<8x128xf32> -> vector<8x128xf32>
    %c0_21 = arith.constant 0 : index
    %c0_22 = arith.constant 0 : index
    %24 = vector.load %arg9[%c0_21, %c0_22] : memref<1x128xf32, #tpu.memory_space<vmem>>, vector<1x128xf32>
    %25 = vector.broadcast %24 : vector<1x128xf32> to vector<8x128xf32>
    %26 = arith.addf %23, %25 : vector<8x128xf32>
    %c0_23 = arith.constant 0 : index
    %c0_24 = arith.constant 0 : index
    %27 = vector.load %arg10[%c0_23, %c0_24] : memref<8x128xf32, #tpu.memory_space<vmem>>, vector<8x128xf32>
    tpu.vector_store %arg10[%c0_23, %c0_24], %26 {strides = array<i32>} : memref<8x128xf32, #tpu.memory_space<vmem>>, vector<8x128xf32>,
    return
  }
  func.func @transform_0(%arg0: i32) -> (i32, i32) {
    %c0_i32 = arith.constant 0 : i32
    %c0_i32_0 = arith.constant 0 : i32
    return %arg0, %c0_i32 : i32, i32
  }
  func.func @transform_1(%arg0: i32) -> (i32, i32) {
    %c0_i32 = arith.constant 0 : i32
    %c0_i32_0 = arith.constant 0 : i32
    %c0_i32_1 = arith.constant 0 : i32
    return %c0_i32, %c0_i32_0 : i32, i32
  }
  func.func @transform_2(%arg0: i32) -> (i32, i32) {
    %c0_i32 = arith.constant 0 : i32
    %c0_i32_0 = arith.constant 0 : i32
    %c0_i32_1 = arith.constant 0 : i32
    return %c0_i32, %c0_i32_0 : i32, i32
  }
  func.func @transform_3(%arg0: i32) -> (i32, i32) {
    %c0_i32 = arith.constant 0 : i32
    %c0_i32_0 = arith.constant 0 : i32
    %c0_i32_1 = arith.constant 0 : i32
    return %c0_i32, %c0_i32_0 : i32, i32
  }
  func.func @transform_4(%arg0: i32) -> (i32, i32) {
    %c0_i32 = arith.constant 0 : i32
    %c0_i32_0 = arith.constant 0 : i32
    %c0_i32_1 = arith.constant 0 : i32
    return %c0_i32, %c0_i32_0 : i32, i32
  }
  func.func @transform_5(%arg0: i32) -> (i32, i32) {
    %c0_i32 = arith.constant 0 : i32
    %c0_i32_0 = arith.constant 0 : i32
    %c0_i32_1 = arith.constant 0 : i32
    return %c0_i32, %c0_i32_0 : i32, i32
  }
  func.func @transform_6(%arg0: i32) -> (i32, i32) {
    %c0_i32 = arith.constant 0 : i32
    %c0_i32_0 = arith.constant 0 : i32
    %c0_i32_1 = arith.constant 0 : i32
    return %c0_i32, %c0_i32_0 : i32, i32
  }
  func.func @transform_7(%arg0: i32) -> (i32, i32) {
    %c0_i32 = arith.constant 0 : i32
    %c0_i32_0 = arith.constant 0 : i32
    %c0_i32_1 = arith.constant 0 : i32
    return %c0_i32, %c0_i32_0 : i32, i32
  }
  func.func @transform_8(%arg0: i32) -> (i32, i32) {
    %c0_i32 = arith.constant 0 : i32
    %c0_i32_0 = arith.constant 0 : i32
    %c0_i32_1 = arith.constant 0 : i32
    return %c0_i32, %c0_i32_0 : i32, i32
  }
  func.func @transform_9(%arg0: i32) -> (i32, i32) {
    %c0_i32 = arith.constant 0 : i32
    %c0_i32_0 = arith.constant 0 : i32
    return %arg0, %c0_i32 : i32, i32
  }
}

</mosaic_0001>

<bundles_post_ra>
// kernel: tpu_custom_call.1
= control target key start
LH: loop header
LB: loop body
LE: loop exit
PB: predicated region body
PF: predicated region fallthrough
CT: control target
= control target key end

     0   :  { %vm42_vm0 = vcmask 261120   ;;  %s408_s0 = inlined_call_operand.vmem [shape: f32[8,32], index: 0, kind: input, shape index: {}]   ;;  %s409_s1 = inlined_call_operand.vmem [shape: f32[32,128], index: 1, kind: input, shape index: {}]   ;;  %s410_s2 = inlined_call_operand.vmem [shape: f32[1,128], index: 2, kind: input, shape index: {}]   ;;  %s411_s3 = inlined_call_operand.vmem [shape: f32[128,64], index: 3, kind: input, shape index: {}]   ;;  %s412_s4 = inlined_call_operand.vmem [shape: f32[1,64], index: 4, kind: input, shape index: {}]   ;;  %s413_s5 = inlined_call_operand.vmem [shape: f32[64,64], index: 5, kind: input, shape index: {}]   ;;  %s414_s6 = inlined_call_operand.vmem [shape: f32[1,64], index: 6, kind: input, shape index: {}]   ;;  %s415_s7 = inlined_call_operand.vmem [shape: f32[64,128], index: 7, kind: input, shape index: {}]   ;;  %s416_s8 = inlined_call_operand.vmem [shape: f32[1,128], index: 8, kind: input, shape index: {}]   ;;  %s417_s9 = inlined_call_operand.hbm [shape: f32[8,128], index: 9, kind: output, shape index: {}]  }
   0x1   :  { %v37_v0 = vld [vmem:[%s409_s1 + $0x18] sm:$0xff]  ;;  %v36_v1 = vld [vmem:[%s409_s1 + $0x10] sm:$0xff]  ;;  %v35_v3 = vld [vmem:[%s409_s1 + $0x8] sm:$0xff] }
   0x2   :  { %58 = vmatpush.msra.mxu0 %v37_v0  ;;  %v82_v2 = vld [vmem:[%s411_s3 + $0x78] sm:$0xff]  ;;  %v81_v4 = vld [vmem:[%s411_s3 + $0x70] sm:$0xff]  ;;  %v80_v5 = vld [vmem:[%s411_s3 + $0x68] sm:$0xff] }
   0x3   :  { %87 = vmatpush.msra.mxu1 %v82_v2  ;;  %v34_v6 = vld [vmem:[%s409_s1] sm:$0xff]  ;;  %v78_v9 = vld [vmem:[%s411_s3 + $0x58] sm:$0xff] }
   0x4   :  { %59 = vmatpush.msra.mxu0 %v36_v1  ;;  %v33_v7 = vld [vmem:[%s408_s0] sm:$0xff] }
   0x5   :  { %88 = vmatpush.msra.mxu1 %v81_v4  ;;  %v79_v8 = vld [vmem:[%s411_s3 + $0x60] sm:$0xff] }
   0x6   :  { %60 = vmatpush.msra.mxu0 %v35_v3 }
   0x7   :  { %89 = vmatpush.msra.mxu1 %v80_v5 }
   0x8   :  { %61 = vmatpush.msra.mxu0 %v34_v6 }
   0x9   :  { %14 = vsyncpa [#allocation3], 0  ;;  %197 = vmatmul.msk.f32.vlgmr.msra.gmra.mxu0 %vm42_vm0, %v33_v7  ;;  %90 = vmatpush.msra.mxu1 %v79_v8  ;;  %v77_v10 = vld [vmem:[%s411_s3 + $0x50] sm:$0xff]  ;;  %v76_v11 = vld [vmem:[%s411_s3 + $0x48] sm:$0xff]  ;;  %vm120_vm1 = vcmask 523264   ;;  %s231_s17 = smov [#allocation2]  }
   0xa   :  { %v75_v12 = vld [vmem:[%s411_s3 + $0x40] sm:$0xff]  ;;  %v74_v13 = vld [vmem:[%s411_s3 + $0x38] sm:$0xff]  ;;  %v73_v14 = vld [vmem:[%s411_s3 + $0x30] sm:$0xff]  ;;  %s186_s18 = sshll.u32 %s231_s17, 4  ;;  %s188_s21 = sshll.u32 %s417_s9, 4  ;;  %s187_s18 = int_to_ptr.vmem [resolvable:$true] %s186_s18  ;;  %s189_s21 = int_to_ptr.hbm [resolvable:$true] %s188_s21 }
   0xb   :  { %91 = vmatpush.msra.mxu1 %v78_v9  ;;  %v72_v15 = vld [vmem:[%s411_s3 + $0x28] sm:$0xff]  ;;  %v71_v16 = vld [vmem:[%s411_s3 + $0x20] sm:$0xff]  ;;  %v70_v17 = vld [vmem:[%s411_s3 + $0x18] sm:$0xff] }
   0xc   :  { %v69_v18 = vld [vmem:[%s411_s3 + $0x10] sm:$0xff]  ;;  %v68_v19 = vld [vmem:[%s411_s3 + $0x8] sm:$0xff]  ;;  %v67_v20 = vld [vmem:[%s411_s3] sm:$0xff] }
   0xd   :  { %92 = vmatpush.msra.mxu1 %v77_v10  ;;  %v115_v21 = vld [vmem:[%s413_s5 + $0x38] sm:$0xff]  ;;  %v114_v22 = vld [vmem:[%s413_s5 + $0x30] sm:$0xff]  ;;  %v113_v23 = vld [vmem:[%s413_s5 + $0x28] sm:$0xff] }
   0xe   :  { %132 = vmatpush.msra.mxu2 %v115_v21  ;;  %v112_v24 = vld [vmem:[%s413_s5 + $0x20] sm:$0xff]  ;;  %v111_v25 = vld [vmem:[%s413_s5 + $0x18] sm:$0xff]  ;;  %v110_v30 = vld [vmem:[%s413_s5 + $0x10] sm:$0xff] }
   0xf   :  { %93 = vmatpush.msra.mxu1 %v76_v11  ;;  %v201_v26 = vld [vmem:[%s410_s2] ss:$0 sm:$0xff]  ;;  %v109_v31 = vld [vmem:[%s413_s5 + $0x8] sm:$0xff]  ;;  %v152_v33 = vld [vmem:[%s415_s7 + $0x38] sm:$0xff] }
  0x10   :  { %133 = vmatpush.msra.mxu2 %v114_v22  ;;  %v108_v32 = vld [vmem:[%s413_s5] sm:$0xff]  ;;  %v151_v34 = vld [vmem:[%s415_s7 + $0x30] sm:$0xff]  ;;  %168 = vmatpush.msra.mxu3 %v152_v33  ;;  %v150_v35 = vld [vmem:[%s415_s7 + $0x28] sm:$0xff] }
  0x11   :  { %94 = vmatpush.msra.mxu1 %v75_v12  ;;  %v149_v36 = vld [vmem:[%s415_s7 + $0x20] sm:$0xff]  ;;  %v148_v37 = vld [vmem:[%s415_s7 + $0x18] sm:$0xff]  ;;  %v147_v42 = vld [vmem:[%s415_s7 + $0x10] sm:$0xff] }
  0x12   :  { %134 = vmatpush.msra.mxu2 %v113_v23  ;;  %169 = vmatpush.msra.mxu3 %v151_v34  ;;  %v202_v38 = vld [vmem:[%s412_s4] ss:$0 sm:$0xff]  ;;  %v146_v43 = vld [vmem:[%s415_s7 + $0x8] sm:$0xff] }
  0x13   :  { %95 = vmatpush.msra.mxu1 %v74_v13  ;;  %v145_v44 = vld [vmem:[%s415_s7] sm:$0xff] }
  0x14   :  { %135 = vmatpush.msra.mxu2 %v112_v24  ;;  %170 = vmatpush.msra.mxu3 %v150_v35  ;;  %v203_v45 = vld [vmem:[%s414_s6] ss:$0 sm:$0xff] }
  0x15   :  { %96 = vmatpush.msra.mxu1 %v73_v14  ;;  %v204_v49 = vld [vmem:[%s416_s8] ss:$0 sm:$0xff] }
  0x16   :  { %136 = vmatpush.msra.mxu2 %v111_v25  ;;  %171 = vmatpush.msra.mxu3 %v149_v36 }
  0x17   :  { %97 = vmatpush.msra.mxu1 %v72_v15 }
  0x18   :  { %137 = vmatpush.msra.mxu2 %v110_v30  ;;  %172 = vmatpush.msra.mxu3 %v148_v37 }
  0x19   :  { %98 = vmatpush.msra.mxu1 %v71_v16 }
  0x1a   :  { %138 = vmatpush.msra.mxu2 %v109_v31  ;;  %173 = vmatpush.msra.mxu3 %v147_v42 }
  0x1b   :  { %99 = vmatpush.msra.mxu1 %v70_v17 }
  0x1c   :  { %139 = vmatpush.msra.mxu2 %v108_v32  ;;  %174 = vmatpush.msra.mxu3 %v146_v43 }
  0x1d   :  { %100 = vmatpush.msra.mxu1 %v69_v18 }
  0x1e   :  { %175 = vmatpush.msra.mxu3 %v145_v44 }
  0x1f   :  { %101 = vmatpush.msra.mxu1 %v68_v19 }
  0x21   :  { %102 = vmatpush.msra.mxu1 %v67_v20 }
  0x86   :  { %v63_v27 = vpop.f32.mrf.mxu0 }
  0x87   :  { %v64_v28 = vadd.f32 %v201_v26, %v63_v27 }
  0x89   :  { %v66_v29 = vmax.f32 %v64_v28, 0.0 }
  0x8b   :  { %103 = vmatmul.f32.vlgmr.msra.gmra.mxu1 %v66_v29 }
 0x108   :  { %v104_v39 = vpop.f32.mrf.mxu1 }
 0x109   :  { %v105_v40 = vadd.f32 %v202_v38, %v104_v39 }
 0x10b   :  { %v107_v41 = vmax.f32 %v105_v40, 0.0 }
 0x10d   :  { %198 = vmatmul.msk.f32.vlgmr.msra.gmra.mxu2 %vm120_vm1, %v107_v41 }
 0x190   :  { %v141_v46 = vpop.f32.mrf.mxu2 }
 0x191   :  { %v142_v47 = vadd.f32 %v203_v45, %v141_v46 }
 0x193   :  { %v144_v48 = vmax.f32 %v142_v47, 0.0 }
 0x195   :  { %199 = vmatmul.msk.f32.vlgmr.msra.gmra.mxu3 %vm120_vm1, %v144_v48 }
 0x218   :  { %v177_v50 = vpop.f32.mrf.mxu3 }
 0x219   :  { %v178_v51 = vadd.f32 %v204_v49, %v177_v50 }
 0x21b   :  { %180 = vst [vmem:[#allocation2] sm:$0xff] %v178_v51 }
 0x21c   :  { %191 = dma.vmem_to_hbm [thread:$0]  %s187_s18, 128, %s189_s21, [#allocation3]  }
 0x21d   :  { %229 = dma.done.wait [#allocation3], 128  }
 0x21e   :  { %230 = vsyncadd [#allocation3], 4294967168 }
 0x21f   :  { %196 = vsyncpa [#allocation3], 1 }

</bundles_post_ra>
